<compile_context>
chip_gen: v7x
topology: tpu7x:2x2x1
jax: 0.10.0
libtpu: 0.0.40
codegen_flags: <defaults>
</compile_context>

<pallas_src>
import functools

import jax
import jax.numpy as jnp
from jax.experimental import pallas as pl
from jax.experimental.pallas import tpu as pltpu


# ----------------------------- Pallas kernel ------------------------------- #
def _fused_encoder_kernel(x_ref, w_ref, b_ref, o_ref, *, inv_s):
    # x_ref: (Bt, S, D)   input tile (streamed / double-buffered)
    # w_ref: (D, Np)      [W_own | W_sem | pad], VMEM-resident across the grid
    # b_ref: (1, Np)      [b_own | b_sem | pad], VMEM-resident
    # o_ref: (Bt, Np)     lane-dense output tile (Np % 128 == 0)
    x = x_ref[...]                                           # native dtype
    # Sequence-sum with an f32 accumulator, scale once on the (Bt, D) result.
    pooled = jnp.sum(x, axis=1, dtype=jnp.float32) * inv_s   # (Bt, D) f32
    # Feed the MXU in the weight dtype (bf16 weights stay bf16), accumulate f32.
    h = jnp.dot(pooled.astype(w_ref.dtype), w_ref[...],
                preferred_element_type=jnp.float32)          # (Bt, Np)
    # Bias + tanh stay fused: VPU add + EUP tanh are free vs. the mem-bound loop.
    o_ref[...] = jnp.tanh(h + b_ref[...].astype(jnp.float32)).astype(o_ref.dtype)


# ------------------------------ wrapper ------------------------------------ #
def _round_up(x, m):
    return ((x + m - 1) // m) * m


def _pick_batch_tile(b, s, d, n_pad, x_itemsize, w_itemsize,
                     cap=128, budget_bytes=24 << 20):
    """Largest Bt (multiple of 8, <= cap) whose double-buffered footprint fits."""
    bt = min(_round_up(max(b, 1), 8), cap)

    def footprint(bt_):
        x_blk = bt_ * s * d * x_itemsize
        o_blk = bt_ * n_pad * 4
        resident = (d + 1) * n_pad * w_itemsize
        return 2 * (x_blk + o_blk) + resident      # 2x = double buffering

    while bt > 8 and footprint(bt) > budget_bytes:
        bt -= 8
    return bt


def fused_encoder_pair(x, w_own, b_own, w_sem, b_sem):
    """One HBM pass over x; returns (own_encoding, semantic_encoding).

    own  = tanh(mean_seq(x) @ w_own + b_own)
    sem  = tanh(mean_seq(x) @ w_sem + b_sem)
    """
    B, S, D = x.shape
    H = w_own.shape[1]
    assert w_own.shape == (D, H) and w_sem.shape == (D, H)
    assert b_own.shape == (1, H) and b_sem.shape == (1, H)

    # Fuse the two encoders along the output (lane) dimension and pad to a
    # multiple of 128 so the store is an unmasked, lane-dense vst.
    w_cat = jnp.concatenate([w_own, w_sem], axis=1)          # (D, 2H)
    b_cat = jnp.concatenate([b_own, b_sem], axis=1)          # (1, 2H)
    N = 2 * H
    Np = _round_up(N, 128)
    if Np != N:
        w_cat = jnp.pad(w_cat, ((0, 0), (0, Np - N)))
        b_cat = jnp.pad(b_cat, ((0, 0), (0, Np - N)))

    # Batch tiling: Bt multiple of 8, sized for the VMEM budget.
    Bt = _pick_batch_tile(B, S, D, Np,
                          jnp.dtype(x.dtype).itemsize,
                          jnp.dtype(w_cat.dtype).itemsize)
    Bp = _round_up(B, Bt)
    if Bp != B:
        x = jnp.pad(x, ((0, Bp - B), (0, 0), (0, 0)))

    kernel = functools.partial(_fused_encoder_kernel, inv_s=1.0 / S)

    out = pl.pallas_call(
        kernel,
        out_shape=jax.ShapeDtypeStruct((Bp, Np), jnp.float32),
        grid=(Bp // Bt,),
        in_specs=[
            pl.BlockSpec((Bt, S, D), lambda i: (i, 0, 0)),   # streamed x tile
            pl.BlockSpec((D, Np), lambda i: (0, 0)),         # VMEM-resident W
            pl.BlockSpec((1, Np), lambda i: (0, 0)),         # VMEM-resident b
        ],
        out_specs=pl.BlockSpec((Bt, Np), lambda i: (i, 0)),
        compiler_params=pltpu.CompilerParams(
            dimension_semantics=("parallel",),               # megacore on v7x
            vmem_limit_bytes=32 << 20,                       # explicit, v7x-safe
        ),
    )(x, w_cat, b_cat)

    own = out[:B, :H]
    sem = out[:B, H:N]
    return own, sem


# --------------------------- CausalEncoder glue ----------------------------- #
def make_encoder_params(key, d_in, d_out, scale=0.02):
    kw, kb = jax.random.split(key)
    w = (scale * jax.random.normal(kw, (d_in, d_out))).astype(jnp.float32)
    b = (scale * jax.random.normal(kb, (1, d_out))).astype(jnp.float32)
    return w, b


def causal_encoder_forward(params, cause_encode, effect_encode):
    """Mirrors CausalEncoder.forward:
       (cause_encoding, effect_encoding,
        semantic_cause_encoding, semantic_effect_encoding)."""
    cw, cb = params["cause"]
    ew, eb = params["effect"]
    sw, sb = params["semantic"]
    # Frozen semantic encoder + torch.no_grad(): forward no-op, blocks grads.
    sw, sb = jax.lax.stop_gradient(sw), jax.lax.stop_gradient(sb)

    cause_encoding, semantic_cause_encoding = fused_encoder_pair(
        cause_encode, cw, cb, sw, sb)
    effect_encoding, semantic_effect_encoding = fused_encoder_pair(
        effect_encode, ew, eb, sw, sb)

    semantic_cause_encoding = jax.lax.stop_gradient(semantic_cause_encoding)
    semantic_effect_encoding = jax.lax.stop_gradient(semantic_effect_encoding)
    return (cause_encoding, effect_encoding,
            semantic_cause_encoding, semantic_effect_encoding)


# ------------------------------- reference ---------------------------------- #
def _ref_encoder(x, w, b):
    return jnp.tanh(jnp.mean(x.astype(jnp.float32), axis=1) @ w + b)


if __name__ == "__main__":
    B, S, D, H = 2, 8, 32, 32  # batch, seq, in-feature, out-feature

    key = jax.random.PRNGKey(0)
    k_cause, k_effect, k_sem, k_x1, k_x2 = jax.random.split(key, 5)

    params = {
        "cause": make_encoder_params(k_cause, D, H),
        "effect": make_encoder_params(k_effect, D, H),
        "semantic": make_encoder_params(k_sem, D, H),
    }

    cause_encode = jax.random.normal(k_x1, (B, S, D), dtype=jnp.float32)
    effect_encode = jax.random.normal(k_x2, (B, S, D), dtype=jnp.float32)

    outs = causal_encoder_forward(params, cause_encode, effect_encode)
    outs = jax.block_until_ready(outs)

    refs = (
        _ref_encoder(cause_encode, *params["cause"]),
        _ref_encoder(effect_encode, *params["effect"]),
        _ref_encoder(cause_encode, *params["semantic"]),
        _ref_encoder(effect_encode, *params["semantic"]),
    )
    for o, r in zip(outs, refs):
        assert o.shape == (B, H), o.shape
        assert jnp.allclose(o, r, atol=1e-5, rtol=1e-5)

    print("KERNEL_OK")
</pallas_src>

<mosaic_0001>
module attributes {stable_mosaic.version = 11 : i64} {
  func.func @_fused_encoder_kernel(%arg0: i32, %arg1: memref<8x8x32xf32, #tpu.memory_space<vmem>>, %arg2: memref<32x128xf32, #tpu.memory_space<vmem>>, %arg3: memref<1x128xf32, #tpu.memory_space<vmem>>, %arg4: memref<8x128xf32, #tpu.memory_space<vmem>>) attributes {dimension_semantics = [#tpu.dimension_semantics<parallel>], iteration_bounds = array<i64: 1>, scalar_prefetch = 0 : i64, scratch_operands = 0 : i64, tpu.core_type = #tpu.core_type<tc>, window_params = [{transform_indices = @transform_0, window_bounds = array<i64: 8, 8, 32>}, {pipeline_mode = #tpu.pipeline_mode<synchronous>, transform_indices = @transform_1, window_bounds = array<i64: 32, 128>}, {pipeline_mode = #tpu.pipeline_mode<synchronous>, transform_indices = @transform_2, window_bounds = array<i64: 1, 128>}, {transform_indices = @transform_3, window_bounds = array<i64: 8, 128>}]} {
    %c0 = arith.constant 0 : index
    %c0_0 = arith.constant 0 : index
    %c0_1 = arith.constant 0 : index
    %0 = vector.load %arg1[%c0, %c0_0, %c0_1] : memref<8x8x32xf32, #tpu.memory_space<vmem>>, vector<8x8x32xf32>
    %cst = arith.constant dense<0.000000e+00> : vector<8x32xf32>
    %1 = vector.multi_reduction <add>, %0, %cst [1] : vector<8x8x32xf32> to vector<8x32xf32>
    %cst_2 = arith.constant 1.250000e-01 : f32
    %2 = vector.broadcast %cst_2 : f32 to vector<8x32xf32>
    %3 = arith.mulf %1, %2 : vector<8x32xf32>
    %c0_3 = arith.constant 0 : index
    %c0_4 = arith.constant 0 : index
    %4 = vector.load %arg2[%c0_3, %c0_4] : memref<32x128xf32, #tpu.memory_space<vmem>>, vector<32x128xf32>
    %cst_5 = arith.constant dense<0.000000e+00> : vector<8x128xf32>
    %5 = tpu.matmul %3, %4, %cst_5 {dimension_numbers = #tpu.dot_dimension_numbers<[1], [0], [0], [1], [0, 0, 1, 1], [], []>} : vector<8x32xf32>, vector<32x128xf32>, vector<8x128xf32> -> vector<8x128xf32>
    %c0_6 = arith.constant 0 : index
    %c0_7 = arith.constant 0 : index
    %6 = vector.load %arg3[%c0_6, %c0_7] : memref<1x128xf32, #tpu.memory_space<vmem>>, vector<1x128xf32>
    %7 = vector.broadcast %6 : vector<1x128xf32> to vector<8x128xf32>
    %8 = arith.addf %5, %7 : vector<8x128xf32>
    %9 = math.tanh %8 : vector<8x128xf32>
    %c0_8 = arith.constant 0 : index
    %c0_9 = arith.constant 0 : index
    %10 = vector.load %arg4[%c0_8, %c0_9] : memref<8x128xf32, #tpu.memory_space<vmem>>, vector<8x128xf32>
    tpu.vector_store %arg4[%c0_8, %c0_9], %9 {strides = array<i32>} : memref<8x128xf32, #tpu.memory_space<vmem>>, vector<8x128xf32>,
    return
  }
  func.func @transform_0(%arg0: i32) -> (i32, i32, i32) {
    %c0_i32 = arith.constant 0 : i32
    %c0_i32_0 = arith.constant 0 : i32
    %c0_i32_1 = arith.constant 0 : i32
    return %arg0, %c0_i32, %c0_i32_0 : i32, i32, i32
  }
  func.func @transform_1(%arg0: i32) -> (i32, i32) {
    %c0_i32 = arith.constant 0 : i32
    %c0_i32_0 = arith.constant 0 : i32
    %c0_i32_1 = arith.constant 0 : i32
    return %c0_i32, %c0_i32_0 : i32, i32
  }
  func.func @transform_2(%arg0: i32) -> (i32, i32) {
    %c0_i32 = arith.constant 0 : i32
    %c0_i32_0 = arith.constant 0 : i32
    %c0_i32_1 = arith.constant 0 : i32
    return %c0_i32, %c0_i32_0 : i32, i32
  }
  func.func @transform_3(%arg0: i32) -> (i32, i32) {
    %c0_i32 = arith.constant 0 : i32
    %c0_i32_0 = arith.constant 0 : i32
    return %arg0, %c0_i32 : i32, i32
  }
}

</mosaic_0001>

<bundles_post_ra>
// kernel: tpu_custom_call.1
= control target key start
LH: loop header
LB: loop body
LE: loop exit
PB: predicated region body
PF: predicated region fallthrough
CT: control target
= control target key end

     0   :  { %8 = vsyncpa [#allocation3], 0  ;;  %s425_s0 = inlined_call_operand.hbm [shape: f32[8,8,32], index: 0, kind: input, shape index: {}]   ;;  %s426_s1 = inlined_call_operand.hbm [shape: f32[32,128], index: 1, kind: input, shape index: {}]   ;;  %s427_s2 = inlined_call_operand.vmem [shape: f32[1,128], index: 2, kind: input, shape index: {}]   ;;  %s428_s3 = inlined_call_operand.hbm [shape: f32[8,128], index: 3, kind: output, shape index: {}]  }
   0x1   :  { %9 = vsyncpa [#allocation6], 0 }
   0x2   :  { %10 = vsyncpa [#allocation4], 0  ;;  %s345_s12 = smov [#allocation2]   ;;  %s273_s16 = scalar_lea.hbm %s425_s0, 1024 }
   0x3   :  { %s16_s13 = sshll.u32 %s345_s12, 4  ;;  %p274_p0 = scmp.ne.s32.totalorder %s425_s0, %s273_s16  ;;  %s17_s13 = int_to_ptr.vmem [resolvable:$true] %s16_s13 }
   0x4   :  { %p277_p1 = scmp.lt.u32.totalorder %s273_s16, %s425_s0 }
   0x6   :  { %p279_p2 = pnand %p277_p1, %p274_p0 }
   0x8   :  { %282 = shalt.err (!%p279_p2)
}
   0x9   :  { %s283_s21 = scalar_lea.vmem %s17_s13, 1024  ;;  %p288_p4 = scmp.lt.s32.totalorder %s17_s13, %s17_s13 }
   0xa   :  { %p284_p3 = scmp.ne.s32.totalorder %s17_s13, %s283_s21  ;;  %p289_p5 = scmp.lt.s32.totalorder %s283_s21, %s283_s21 }
   0xc   :  { %p290_p6 = por %p289_p5, %p288_p4 }
   0xe   :  { %p291_p7 = pnand %p290_p6, %p284_p3 }
  0x10   :  { %294 = shalt.err (!%p291_p7)
}
  0x11   :  { %s346_s22 = smov 128   ;;  %s347_s23 = smov 8  }
  0x12   :  { %22 = dma.hbm_to_vmem [thread:$0]  %s425_s0, 1024, %s17_s13, [#allocation3], %s346_s22, %s346_s22, %s347_s23  }
  0x13   :  { %s348_s26 = smov [#allocation5]   ;;  %s295_s30 = scalar_lea.hbm %s426_s1, 512 }
  0x14   :  { %s28_s27 = sshll.u32 %s348_s26, 4  ;;  %p296_p8 = scmp.ne.s32.totalorder %s426_s1, %s295_s30  ;;  %s29_s27 = int_to_ptr.vmem [resolvable:$true] %s28_s27 }
  0x15   :  { %p299_p9 = scmp.lt.u32.totalorder %s295_s30, %s426_s1 }
  0x17   :  { %p301_p10 = pnand %p299_p9, %p296_p8 }
  0x19   :  { %304 = shalt.err (!%p301_p10)
}
  0x1a   :  { %s305_s8 = scalar_lea.vmem %s29_s27, 512  ;;  %p310_p12 = scmp.lt.s32.totalorder %s29_s27, %s29_s27 }
  0x1b   :  { %p306_p11 = scmp.ne.s32.totalorder %s29_s27, %s305_s8  ;;  %p311_p13 = scmp.lt.s32.totalorder %s305_s8, %s305_s8 }
  0x1d   :  { %p312_p0 = por %p311_p13, %p310_p12 }
  0x1f   :  { %p313_p1 = pnand %p312_p0, %p306_p11 }
  0x21   :  { %316 = shalt.err (!%p313_p1)
}
  0x22   :  { %34 = dma.hbm_to_vmem [thread:$0]  %s426_s1, 512, %s29_s27, [#allocation6], %s346_s22, %s346_s22, %s347_s23  }
  0x23   :  { %339 = dma.done.wait [#allocation3], 1024  }
  0x24   :  { %340 = vsyncadd [#allocation3], 4294966272 }
  0x25   :  { %341 = dma.done.wait [#allocation6], 512  }
  0x26   :  { %342 = vsyncadd [#allocation6], 4294966784  ;;  %v349_v0 = vmov 0.0|0.0   ;;  %vm350_vm0 = vmmov 0   ;;  %v351_v1 = vmov 0.0   ;;  %vm51_vm1 = vcmask 261120  }
  0x27   :  { %257 = vmatprep.subr.bf16.mxu0 %v349_v0  ;;  %254 = vmatprep.mubr.msk.f32.mxu0 %vm350_vm0, %v351_v1  ;;  %v116_v2 = vld [vmem:[#allocation5] sm:$0xff]  ;;  %v117_v3 = vld [vmem:[#allocation5 + $0x8] sm:$0xff]  ;;  %v118_v4 = vld [vmem:[#allocation5 + $0x10] sm:$0xff]  ;;  %vm135_vm2 = vcmask 1041409   ;;  %vm137_vm3 = vcmask 1042434   ;;  %vm139_vm4 = vcmask 1043459  }
  0x28   :  { %v258_v5 = vpack.c.bf16 %v117_v3, %v116_v2  ;;  %v119_v6 = vld [vmem:[#allocation5 + $0x18] sm:$0xff]  ;;  %v43_v7 = vld [vmem:[#allocation2] sm:$0xff]  ;;  %v44_v8 = vld [vmem:[#allocation2 + $0x8] sm:$0xff]  ;;  %vm141_vm5 = vcmask 1044484   ;;  %vm143_vm6 = vcmask 1045509   ;;  %vm145_vm7 = vcmask 1046534  }
  0x29   :  { %v45_v9 = vld [vmem:[#allocation2 + $0x10] sm:$0xff]  ;;  %v46_v10 = vld [vmem:[#allocation2 + $0x18] sm:$0xff]  ;;  %v47_v11 = vld [vmem:[#allocation2 + $0x20] sm:$0xff]  ;;  %v52_v12 = vsel %vm51_vm1, %v43_v7, 0.0  ;;  %v59_v13 = vsel %vm51_vm1, %v44_v8, 0.0  ;;  %v261_v14 = vpack.c.bf16 %v119_v6, %v118_v4  ;;  %vm147_vm8 = vcmask 1047559  }
  0x2a   :  { %259 = vmatpush3.bf16.msra.mxu0 %v258_v5  ;;  %v48_v15 = vld [vmem:[#allocation2 + $0x28] sm:$0xff]  ;;  %v49_v16 = vld [vmem:[#allocation2 + $0x30] sm:$0xff]  ;;  %v50_v17 = vld [vmem:[#allocation2 + $0x38] sm:$0xff]  ;;  %v53_v18 = vrot.slane %v52_v12, 4  ;;  %v60_v19 = vrot.slane %v59_v13, 4  ;;  %v66_v20 = vsel %vm51_vm1, %v45_v9, 0.0 }
  0x2b   :  { %260 = vmatprep.subr.bf16.mxu0 %v349_v0  ;;  %v67_v21 = vrot.slane %v66_v20, 4  ;;  %v73_v22 = vsel %vm51_vm1, %v46_v10, 0.0  ;;  %v80_v23 = vsel %vm51_vm1, %v47_v11, 0.0  ;;  %v87_v24 = vsel %vm51_vm1, %v48_v15, 0.0  ;;  %s352_s11 = smov [#allocation7]  }
  0x2c   :  { %v54_v25 = vadd.f32 %v53_v18, %v52_v12  ;;  %v61_v26 = vadd.f32 %v60_v19, %v59_v13  ;;  %v74_v27 = vrot.slane %v73_v22, 4  ;;  %v81_v28 = vrot.slane %v80_v23, 4  ;;  %s229_s12 = sshll.u32 %s352_s11, 4  ;;  %s230_s12 = int_to_ptr.vmem [resolvable:$true] %s229_s12 }
  0x2d   :  { %v68_v29 = vadd.f32 %v67_v21, %v66_v20  ;;  %v88_v30 = vrot.slane %v87_v24, 4  ;;  %v94_v31 = vsel %vm51_vm1, %v49_v16, 0.0  ;;  %v101_v32 = vsel %vm51_vm1, %v50_v17, 0.0  ;;  %s317_s13 = scalar_lea.vmem %s230_s12, 128  ;;  %p322_p3 = scmp.lt.s32.totalorder %s230_s12, %s230_s12 }
  0x2e   :  { %262 = vmatpush3.bf16.msra.mxu0 %v261_v14  ;;  %v55_v33 = vrot.slane %v54_v25, 2  ;;  %v62_v34 = vrot.slane %v61_v26, 2  ;;  %v75_v35 = vadd.f32 %v74_v27, %v73_v22  ;;  %v82_v36 = vadd.f32 %v81_v28, %v80_v23  ;;  %v239_v23 = vld [vmem:[%s427_s2] ss:$0 sm:$0xff]  ;;  %p318_p2 = scmp.ne.s32.totalorder %s230_s12, %s317_s13  ;;  %p323_p4 = scmp.lt.s32.totalorder %s317_s13, %s317_s13 }
  0x2f   :  { %v69_v37 = vrot.slane %v68_v29, 2  ;;  %v89_v38 = vadd.f32 %v88_v30, %v87_v24  ;;  %v95_v39 = vrot.slane %v94_v31, 4  ;;  %v102_v40 = vrot.slane %v101_v32, 4 }
  0x30   :  { %v56_v41 = vadd.f32 %v55_v33, %v54_v25  ;;  %v63_v42 = vadd.f32 %v62_v34, %v61_v26  ;;  %v76_v43 = vrot.slane %v75_v35, 2  ;;  %v83_v44 = vrot.slane %v82_v36, 2  ;;  %p324_p5 = por %p323_p4, %p322_p3 }
  0x31   :  { %v70_v45 = vadd.f32 %v69_v37, %v68_v29  ;;  %v90_v46 = vrot.slane %v89_v38, 2  ;;  %v96_v47 = vadd.f32 %v95_v39, %v94_v31  ;;  %v103_v48 = vadd.f32 %v102_v40, %v101_v32 }
  0x32   :  { %v57_v49 = vrot.slane %v56_v41, 1  ;;  %v64_v50 = vrot.slane %v63_v42, 1  ;;  %v77_v51 = vadd.f32 %v76_v43, %v75_v35  ;;  %v84_v52 = vadd.f32 %v83_v44, %v82_v36  ;;  %p325_p6 = pnand %p324_p5, %p318_p2 }
  0x33   :  { %v71_v53 = vrot.slane %v70_v45, 1  ;;  %v91_v54 = vadd.f32 %v90_v46, %v89_v38  ;;  %v97_v55 = vrot.slane %v96_v47, 2  ;;  %v104_v56 = vrot.slane %v103_v48, 2 }
  0x34   :  { %v58_v57 = vadd.f32 %v57_v49, %v56_v41  ;;  %v65_v58 = vadd.f32 %v64_v50, %v63_v42  ;;  %v78_v59 = vrot.slane %v77_v51, 1  ;;  %v85_v60 = vrot.slane %v84_v52, 1 }
  0x35   :  { %v72_v61 = vadd.f32 %v71_v53, %v70_v45  ;;  %v92_v62 = vrot.slane %v91_v54, 1  ;;  %v98_v63 = vadd.f32 %v97_v55, %v96_v47  ;;  %v105_v0 = vadd.f32 %v104_v56, %v103_v48 }
  0x36   :  { %v79_v1 = vadd.f32 %v78_v59, %v77_v51  ;;  %v86_v2 = vadd.f32 %v85_v60, %v84_v52  ;;  %v108_v3 = vmul.f32 0.125, %v58_v57  ;;  %v109_v4 = vmul.f32 0.125, %v65_v58 }
  0x37   :  { %v93_v5 = vadd.f32 %v92_v62, %v91_v54  ;;  %v99_v6 = vrot.slane %v98_v63, 1  ;;  %v106_v7 = vrot.slane %v105_v0, 1  ;;  %v110_v8 = vmul.f32 0.125, %v72_v61 }
  0x38   :  { %v111_v9 = vmul.f32 0.125, %v79_v1  ;;  %v112_v10 = vmul.f32 0.125, %v86_v2  ;;  %v136_v11 = vsel %vm135_vm2, %v109_v4, %v108_v3 }
  0x39   :  { %v100_v12 = vadd.f32 %v99_v6, %v98_v63  ;;  %v107_v13 = vadd.f32 %v106_v7, %v105_v0  ;;  %v113_v14 = vmul.f32 0.125, %v93_v5  ;;  %v138_v15 = vsel %vm137_vm3, %v110_v8, %v136_v11 }
  0x3a   :  { %v140_v16 = vsel %vm139_vm4, %v111_v9, %v138_v15 }
  0x3b   :  { %v114_v17 = vmul.f32 0.125, %v100_v12  ;;  %v115_v18 = vmul.f32 0.125, %v107_v13  ;;  %v142_v19 = vsel %vm141_vm5, %v112_v10, %v140_v16 }
  0x3c   :  { %v144_v20 = vsel %vm143_vm6, %v113_v14, %v142_v19 }
  0x3d   :  { %v146_v21 = vsel %vm145_vm7, %v114_v17, %v144_v20 }
  0x3e   :  { %v148_v22 = vsel %vm147_vm8, %v115_v18, %v146_v21 }
  0x3f   :  { %255 = vmatmul.mubr.msk.f32.vlgmr.msra.gmra.mrb[0].mxu0 %vm51_vm1, %v148_v22 }
 0x112   :  { %v217_v24 = vpop.f32.mrb[0].mxu0 }
 0x113   :  { %v218_v25 = vadd.f32 %v239_v23, %v217_v24  ;;  %v256_v26 = vpop.f32.mrb[1].mxu0 }
 0x115   :  { %271 = vtanh.f32 %v218_v25 }
 0x11f   :  { %v272_v27 = vpop.eup %271 }
 0x120   :  { %222 = vst [vmem:[#allocation7] sm:$0xff] %v272_v27 }
 0x121   :  { %328 = shalt.err (!%p325_p6)
}
 0x122   :  { %s329_s2 = scalar_lea.hbm %s428_s3, 128 }
 0x123   :  { %p330_p7 = scmp.ne.s32.totalorder %s428_s3, %s329_s2  ;;  %p333_p8 = scmp.lt.u32.totalorder %s329_s2, %s428_s3 }
 0x125   :  { %p335_p9 = pnand %p333_p8, %p330_p7 }
 0x127   :  { %338 = shalt.err (!%p335_p9)
}
 0x128   :  { %232 = dma.vmem_to_hbm [thread:$0]  %s230_s12, 128, %s428_s3, [#allocation4]  }
 0x129   :  { %343 = dma.done.wait [#allocation4], 128  }
 0x12a   :  { %344 = vsyncadd [#allocation4], 4294967168 }
 0x12b   :  { %236 = vsyncpa [#allocation3], 1 }
 0x12c   :  { %237 = vsyncpa [#allocation6], 1 }
 0x12d   :  { %238 = vsyncpa [#allocation4], 1 }

</bundles_post_ra>
